<compile_context>
chip_gen: v5e
topology: v5e:2x2
jax: 0.10.0
libtpu: 0.0.40
codegen_flags: <defaults>
</compile_context>

<pallas_src>
import functools

import jax
import jax.numpy as jnp
from jax.experimental import pallas as pl
from jax.experimental.pallas import tpu as pltpu


MXU_DTYPE = jnp.bfloat16   # MXU operand dtype (accumulation stays f32 via preferred_element_type)
LANE = 128                 # TPU lane width: pad trailing dims to multiples of this


def _round_up(v, m):
    return ((v + m - 1) // m) * m


# ---------------------------------------------------------------------------
# Fused Pallas kernel: encoder (num_layers GCN + mu GCN) + inner-product decoder
# ---------------------------------------------------------------------------

def _fused_vgae_kernel(adj_norm_ref, a_ref, x_ref, *rest, num_layers):
    """rest = (w_0, b_0, ..., w_{L-1}, b_{L-1}, w_mu, b_mu, out_ref); all shapes lane-padded."""
    out_ref = rest[-1]
    wb_refs = rest[:-1]
    assert len(wb_refs) == 2 * (num_layers + 1)

    a = a_ref[...]                                  # [Np, Np] bf16 (cast in wrapper)
    h = x_ref[...].astype(jnp.float32)              # [Np, Fp] f32

    def gcn(h, w_ref, b_ref, relu):
        w = w_ref[...]                              # bf16 (cast in wrapper)
        b = b_ref[...].astype(jnp.float32)          # [1, Fo] broadcast over rows
        f_in, f_out = w.shape
        if f_in <= f_out:
            # Widening layer: (A @ h) @ W keeps the N^2-sized matmul at width F_in.
            ah = jnp.dot(a, h.astype(MXU_DTYPE), preferred_element_type=jnp.float32)
            y = jnp.dot(ah.astype(MXU_DTYPE), w, preferred_element_type=jnp.float32)
        else:
            # Narrowing layer: A @ (h @ W) keeps the N^2-sized matmul at width F_out.
            hw = jnp.dot(h.astype(MXU_DTYPE), w, preferred_element_type=jnp.float32)
            y = jnp.dot(a, hw.astype(MXU_DTYPE), preferred_element_type=jnp.float32)
        y = y + b                                   # f32 epilogue (v5e has no bf16 VPU/EUP)
        if relu:
            y = jnp.maximum(y, 0.0)
        return y

    # Hidden GCN layers: GCNConv -> ReLU -> Dropout(eval = identity); batch_norm off.
    for i in range(num_layers):
        h = gcn(h, wb_refs[2 * i], wb_refs[2 * i + 1], relu=True)

    # mu layer (logstd layer is dead in the eval forward and therefore not computed).
    z = gcn(h, wb_refs[2 * num_layers], wb_refs[2 * num_layers + 1], relu=False)

    # Inner-product decoder: sigmoid(z z^T) * adj_norm.
    # Contract the last dim of both operands -> no explicit transpose / relayout of z.
    logits = jax.lax.dot_general(
        z.astype(MXU_DTYPE), z.astype(MXU_DTYPE),
        dimension_numbers=(((1,), (1,)), ((), ())),
        preferred_element_type=jnp.float32,
    )
    adj_norm = adj_norm_ref[0]
    out_ref[...] = (jax.nn.sigmoid(logits) * adj_norm).astype(out_ref.dtype)


# ---------------------------------------------------------------------------
# Wrapper: pad to lane-aligned shapes, cast MXU operands to bf16, single pallas_call
# ---------------------------------------------------------------------------

def graph_model_forward(x, a_hat, params, adj_norm):
    n, f_in0 = x.shape
    num_layers = len(params["convs"])
    n_pad = _round_up(n, LANE)

    def pad2(m, rows, cols):
        return jnp.pad(m, ((0, rows - m.shape[0]), (0, cols - m.shape[1])))

    # Zero padding is exact: padded cols of A_hat kill padded rows of h in every A@h; padded
    # cols of W / b stay zero so padded feature cols of z are zero; padded rows/cols of the
    # decoder output are sliced off below.
    operands = [jnp.asarray([adj_norm], jnp.float32)]                                 # SMEM scalar
    operands.append(pad2(a_hat.astype(jnp.float32), n_pad, n_pad).astype(MXU_DTYPE))  # [Np, Np]
    f0_pad = _round_up(f_in0, LANE)
    operands.append(pad2(x.astype(jnp.float32), n_pad, f0_pad))                       # [Np, F0p]

    weight_dims = []
    all_wb = list(params["convs"]) + [(params["w_mu"], params["b_mu"])]
    for (w, b) in all_wb:
        fi, fo = w.shape
        fi_p, fo_p = _round_up(fi, LANE), _round_up(fo, LANE)
        weight_dims.append((fi_p, fo_p))
        operands.append(pad2(w.astype(jnp.float32), fi_p, fo_p).astype(MXU_DTYPE))
        operands.append(pad2(b.reshape(1, -1).astype(jnp.float32), 1, fo_p))

    in_specs = [pl.BlockSpec(memory_space=pltpu.MemorySpace.SMEM)]
    in_specs += [pl.BlockSpec(memory_space=pltpu.MemorySpace.VMEM)
                 for _ in operands[1:]]

    # VMEM limit sized to the actual resident footprint (operands + output + intermediates),
    # with margin; clamped well under physical VMEM on all of v5e/v6e/v7x.
    out_bytes = n_pad * n_pad * 4
    operand_bytes = int(sum(op.size * op.dtype.itemsize for op in operands[1:]))
    vmem_limit = int(min(max((operand_bytes + out_bytes) * 4 + (4 << 20), 32 << 20), 100 << 20))

    # Advisory cost estimate for XLA's scheduler.
    flops = 0
    for (fi_p, fo_p) in weight_dims:
        flops += 2 * n_pad * n_pad * min(fi_p, fo_p)   # A_hat-sized matmul
        flops += 2 * n_pad * fi_p * fo_p               # weight matmul
    flops += 2 * n_pad * n_pad * weight_dims[-1][1]    # decoder z z^T
    cost = pl.CostEstimate(flops=int(flops),
                           transcendentals=int(n_pad * n_pad),
                           bytes_accessed=int(operand_bytes + out_bytes))

    kernel = functools.partial(_fused_vgae_kernel, num_layers=num_layers)
    out_pad = pl.pallas_call(
        kernel,
        out_shape=jax.ShapeDtypeStruct((n_pad, n_pad), jnp.float32),
        in_specs=in_specs,
        out_specs=pl.BlockSpec(memory_space=pltpu.MemorySpace.VMEM),
        compiler_params=pltpu.CompilerParams(vmem_limit_bytes=vmem_limit),
        cost_estimate=cost,
    )(*operands)
    return out_pad[:n, :n]


# ---------------------------------------------------------------------------
# Glue (plain JAX): adjacency normalization, parameter init, pure-JAX reference
# ---------------------------------------------------------------------------

def gcn_norm_adjacency(edge_index, n):
    """Dense D^{-1/2}(A + I)D^{-1/2} as in torch_geometric GCNConv (add_self_loops=True)."""
    a = jnp.zeros((n, n), jnp.float32)
    a = a.at[edge_index[0], edge_index[1]].set(1.0)
    a = a + jnp.eye(n, dtype=jnp.float32)
    deg = a.sum(axis=1)
    d_inv_sqrt = jnp.where(deg > 0, 1.0 / jnp.sqrt(deg), 0.0)
    return a * d_inv_sqrt[:, None] * d_inv_sqrt[None, :]


def init_params(key, num_features, hidden, out, num_layers):
    params = {"convs": []}
    dims = [(num_features, hidden)] + [(hidden, hidden)] * (num_layers - 1)
    for (fi, fo) in dims:
        key, kw = jax.random.split(key)
        scale = jnp.sqrt(6.0 / (fi + fo))  # glorot-uniform, as in GCNConv
        w = jax.random.uniform(kw, (fi, fo), jnp.float32, -scale, scale)
        b = jnp.zeros((fo,), jnp.float32)
        params["convs"].append((w, b))
    key, kw = jax.random.split(key)
    scale = jnp.sqrt(6.0 / (hidden + out))
    params["w_mu"] = jax.random.uniform(kw, (hidden, out), jnp.float32, -scale, scale)
    params["b_mu"] = jnp.zeros((out,), jnp.float32)
    return params


def graph_model_forward_ref(x, a_hat, params, adj_norm):
    """Pure-JAX f32 reference of the eval-mode forward."""
    h = x
    for (w, b) in params["convs"]:
        h = jnp.maximum(a_hat @ h @ w + b[None, :], 0.0)
    z = a_hat @ h @ params["w_mu"] + params["b_mu"][None, :]
    return jax.nn.sigmoid(z @ z.T) * adj_norm


# ---------------------------------------------------------------------------
# Main
# ---------------------------------------------------------------------------

if __name__ == "__main__":
    # Small, forward-consistent sizes:
    N = 64             # number of graph nodes
    NUM_FEATURES = 16  # args.num_features
    HIDDEN = 32        # args.graph_latent_dim
    OUT = 16           # args.node_latent_dim
    NUM_LAYERS = 2     # args.num_layers  (use_batch_norm=False, dropout eval = identity)

    key = jax.random.PRNGKey(0)
    key, kx, kp = jax.random.split(key, 3)

    # Deterministic ring graph (symmetric edges), edge_index shape (2, E)
    src = jnp.arange(N, dtype=jnp.int32)
    dst = (src + 1) % N
    edge_index = jnp.concatenate(
        [jnp.stack([src, dst], axis=0), jnp.stack([dst, src], axis=0)], axis=1
    )
    num_edges = edge_index.shape[1]

    # adj_norm = n*n / ((n*n - dadj.sum()) * 2), dadj.sum() == number of stored ones
    adj_norm = (N * N) / float((N * N - num_edges) * 2)

    x = jax.random.normal(kx, (N, NUM_FEATURES), jnp.float32)
    a_hat = gcn_norm_adjacency(edge_index, N)
    params = init_params(kp, NUM_FEATURES, HIDDEN, OUT, NUM_LAYERS)

    adj_pred = graph_model_forward(x, a_hat, params, adj_norm)
    adj_pred = jax.block_until_ready(adj_pred)

    assert adj_pred.shape == (N, N)
    assert bool(jnp.all(jnp.isfinite(adj_pred)))
    # Output is sigmoid(logits) * adj_norm -> within [0, adj_norm]
    assert bool(jnp.all(adj_pred >= 0.0)) and bool(jnp.all(adj_pred <= adj_norm))

    # Compare against the f32 pure-JAX reference (loose tolerance: bf16 MXU operands).
    ref = graph_model_forward_ref(x, a_hat, params, adj_norm)
    max_err = float(jnp.max(jnp.abs(adj_pred - ref)))
    assert max_err < 5e-2, f"max abs error vs f32 reference too large: {max_err}"

    print("KERNEL_OK")
</pallas_src>

<mosaic_0001>
module attributes {stable_mosaic.version = 11 : i64} {
  func.func @_fused_vgae_kernel(%arg0: memref<1xf32, #tpu.memory_space<smem>>, %arg1: memref<128x128xbf16, #tpu.memory_space<vmem>>, %arg2: memref<128x128xf32, #tpu.memory_space<vmem>>, %arg3: memref<128x128xbf16, #tpu.memory_space<vmem>>, %arg4: memref<1x128xf32, #tpu.memory_space<vmem>>, %arg5: memref<128x128xbf16, #tpu.memory_space<vmem>>, %arg6: memref<1x128xf32, #tpu.memory_space<vmem>>, %arg7: memref<128x128xbf16, #tpu.memory_space<vmem>>, %arg8: memref<1x128xf32, #tpu.memory_space<vmem>>, %arg9: memref<128x128xf32, #tpu.memory_space<vmem>>) attributes {dimension_semantics = [], scalar_prefetch = 0 : i64, scratch_operands = 0 : i64, tpu.core_type = #tpu.core_type<tc>} {
    %c0 = arith.constant 0 : index
    %c0_0 = arith.constant 0 : index
    %0 = vector.load %arg1[%c0, %c0_0] : memref<128x128xbf16, #tpu.memory_space<vmem>>, vector<128x128xbf16>
    %c0_1 = arith.constant 0 : index
    %c0_2 = arith.constant 0 : index
    %1 = vector.load %arg2[%c0_1, %c0_2] : memref<128x128xf32, #tpu.memory_space<vmem>>, vector<128x128xf32>
    %c0_3 = arith.constant 0 : index
    %c0_4 = arith.constant 0 : index
    %2 = vector.load %arg3[%c0_3, %c0_4] : memref<128x128xbf16, #tpu.memory_space<vmem>>, vector<128x128xbf16>
    %c0_5 = arith.constant 0 : index
    %c0_6 = arith.constant 0 : index
    %3 = vector.load %arg4[%c0_5, %c0_6] : memref<1x128xf32, #tpu.memory_space<vmem>>, vector<1x128xf32>
    %4 = arith.truncf %1 : vector<128x128xf32> to vector<128x128xbf16>
    %cst = arith.constant dense<0.000000e+00> : vector<128x128xf32>
    %5 = tpu.matmul %0, %4, %cst {dimension_numbers = #tpu.dot_dimension_numbers<[1], [0], [0], [1], [0, 0, 1, 1], [], []>} : vector<128x128xbf16>, vector<128x128xbf16>, vector<128x128xf32> -> vector<128x128xf32>
    %6 = arith.truncf %5 : vector<128x128xf32> to vector<128x128xbf16>
    %cst_7 = arith.constant dense<0.000000e+00> : vector<128x128xf32>
    %7 = tpu.matmul %6, %2, %cst_7 {dimension_numbers = #tpu.dot_dimension_numbers<[1], [0], [0], [1], [0, 0, 1, 1], [], []>} : vector<128x128xbf16>, vector<128x128xbf16>, vector<128x128xf32> -> vector<128x128xf32>
    %8 = vector.broadcast %3 : vector<1x128xf32> to vector<128x128xf32>
    %9 = arith.addf %7, %8 : vector<128x128xf32>
    %cst_8 = arith.constant 0.000000e+00 : f32
    %10 = vector.broadcast %cst_8 : f32 to vector<128x128xf32>
    %11 = arith.maximumf %9, %10 : vector<128x128xf32>
    %c0_9 = arith.constant 0 : index
    %c0_10 = arith.constant 0 : index
    %12 = vector.load %arg5[%c0_9, %c0_10] : memref<128x128xbf16, #tpu.memory_space<vmem>>, vector<128x128xbf16>
    %c0_11 = arith.constant 0 : index
    %c0_12 = arith.constant 0 : index
    %13 = vector.load %arg6[%c0_11, %c0_12] : memref<1x128xf32, #tpu.memory_space<vmem>>, vector<1x128xf32>
    %14 = arith.truncf %11 : vector<128x128xf32> to vector<128x128xbf16>
    %cst_13 = arith.constant dense<0.000000e+00> : vector<128x128xf32>
    %15 = tpu.matmul %0, %14, %cst_13 {dimension_numbers = #tpu.dot_dimension_numbers<[1], [0], [0], [1], [0, 0, 1, 1], [], []>} : vector<128x128xbf16>, vector<128x128xbf16>, vector<128x128xf32> -> vector<128x128xf32>
    %16 = arith.truncf %15 : vector<128x128xf32> to vector<128x128xbf16>
    %cst_14 = arith.constant dense<0.000000e+00> : vector<128x128xf32>
    %17 = tpu.matmul %16, %12, %cst_14 {dimension_numbers = #tpu.dot_dimension_numbers<[1], [0], [0], [1], [0, 0, 1, 1], [], []>} : vector<128x128xbf16>, vector<128x128xbf16>, vector<128x128xf32> -> vector<128x128xf32>
    %18 = vector.broadcast %13 : vector<1x128xf32> to vector<128x128xf32>
    %19 = arith.addf %17, %18 : vector<128x128xf32>
    %cst_15 = arith.constant 0.000000e+00 : f32
    %20 = vector.broadcast %cst_15 : f32 to vector<128x128xf32>
    %21 = arith.maximumf %19, %20 : vector<128x128xf32>
    %c0_16 = arith.constant 0 : index
    %c0_17 = arith.constant 0 : index
    %22 = vector.load %arg7[%c0_16, %c0_17] : memref<128x128xbf16, #tpu.memory_space<vmem>>, vector<128x128xbf16>
    %c0_18 = arith.constant 0 : index
    %c0_19 = arith.constant 0 : index
    %23 = vector.load %arg8[%c0_18, %c0_19] : memref<1x128xf32, #tpu.memory_space<vmem>>, vector<1x128xf32>
    %24 = arith.truncf %21 : vector<128x128xf32> to vector<128x128xbf16>
    %cst_20 = arith.constant dense<0.000000e+00> : vector<128x128xf32>
    %25 = tpu.matmul %0, %24, %cst_20 {dimension_numbers = #tpu.dot_dimension_numbers<[1], [0], [0], [1], [0, 0, 1, 1], [], []>} : vector<128x128xbf16>, vector<128x128xbf16>, vector<128x128xf32> -> vector<128x128xf32>
    %26 = arith.truncf %25 : vector<128x128xf32> to vector<128x128xbf16>
    %cst_21 = arith.constant dense<0.000000e+00> : vector<128x128xf32>
    %27 = tpu.matmul %26, %22, %cst_21 {dimension_numbers = #tpu.dot_dimension_numbers<[1], [0], [0], [1], [0, 0, 1, 1], [], []>} : vector<128x128xbf16>, vector<128x128xbf16>, vector<128x128xf32> -> vector<128x128xf32>
    %28 = vector.broadcast %23 : vector<1x128xf32> to vector<128x128xf32>
    %29 = arith.addf %27, %28 : vector<128x128xf32>
    %30 = arith.truncf %29 : vector<128x128xf32> to vector<128x128xbf16>
    %31 = arith.truncf %29 : vector<128x128xf32> to vector<128x128xbf16>
    %cst_22 = arith.constant dense<0.000000e+00> : vector<128x128xf32>
    %32 = tpu.matmul %30, %31, %cst_22 {dimension_numbers = #tpu.dot_dimension_numbers<[1], [1], [0], [0], [0, 0, 1, 0], [], []>} : vector<128x128xbf16>, vector<128x128xbf16>, vector<128x128xf32> -> vector<128x128xf32>
    %c0_23 = arith.constant 0 : index
    %33 = memref.load %arg0[%c0_23] : memref<1xf32, #tpu.memory_space<smem>>
    %34 = arith.negf %32 : vector<128x128xf32>
    %35 = math.exp %34 : vector<128x128xf32>
    %cst_24 = arith.constant 1.000000e+00 : f32
    %36 = vector.broadcast %cst_24 : f32 to vector<128x128xf32>
    %37 = arith.addf %36, %35 : vector<128x128xf32>
    %38 = arith.divf %36, %37 : vector<128x128xf32>
    %39 = vector.broadcast %33 : f32 to vector<128x128xf32>
    %40 = arith.mulf %38, %39 : vector<128x128xf32>
    %c0_25 = arith.constant 0 : index
    %c0_26 = arith.constant 0 : index
    %41 = vector.load %arg9[%c0_25, %c0_26] : memref<128x128xf32, #tpu.memory_space<vmem>>, vector<128x128xf32>
    tpu.vector_store %arg9[%c0_25, %c0_26], %40 {strides = array<i32>} : memref<128x128xf32, #tpu.memory_space<vmem>>, vector<128x128xf32>,
    return
  }
}

</mosaic_0001>

<bundles_post_ra>
// kernel: tpu_custom_call.1
= control target key start
LH: loop header
LB: loop body
LE: loop exit
PB: predicated region body
PF: predicated region fallthrough
CT: control target
= control target key end

     0   :  { %15 = vsyncpa [#allocation4], 0  ;;  %s1769_s0 = inlined_call_operand.<no memory space> [shape: f32[1], index: 0, kind: input, shape index: {}]   ;;  %s1770_s1 = inlined_call_operand.hbm [shape: bf16[128,128], index: 1, kind: input, shape index: {}]   ;;  %s1771_s2 = inlined_call_operand.hbm [shape: f32[128,128], index: 2, kind: input, shape index: {}]   ;;  %s1772_s3 = inlined_call_operand.hbm [shape: bf16[128,128], index: 3, kind: input, shape index: {}]   ;;  %s1773_s4 = inlined_call_operand.vmem [shape: f32[1,128], index: 4, kind: input, shape index: {}]   ;;  %s1774_s5 = inlined_call_operand.hbm [shape: bf16[128,128], index: 5, kind: input, shape index: {}]   ;;  %s1775_s6 = inlined_call_operand.vmem [shape: f32[1,128], index: 6, kind: input, shape index: {}]   ;;  %s1776_s7 = inlined_call_operand.hbm [shape: bf16[128,128], index: 7, kind: input, shape index: {}]   ;;  %s1777_s8 = inlined_call_operand.vmem [shape: f32[1,128], index: 8, kind: input, shape index: {}]   ;;  %s1778_s9 = inlined_call_operand.hbm [shape: f32[128,128], index: 9, kind: output, shape index: {}]  }
   0x1   :  { %16 = vsyncpa [#allocation7], 0 }
   0x2   :  { %17 = vsyncpa [#allocation10], 0  ;;  %s38_s11 = sshll.u32 %s1771_s2, 4  ;;  %s39_s11 = int_to_ptr.hbm [resolvable:$true] %s38_s11 }
   0x3   :  { %18 = vsyncpa [#allocation5], 0  ;;  %s1615_s12 = smov [#allocation6]   ;;  %s1616_s14 = smov 128  }
   0x4   :  { %s40_s13 = sshll.u32 %s1615_s12, 4  ;;  %s1617_s15 = smov 8   ;;  %s41_s13 = int_to_ptr.vmem [resolvable:$true] %s40_s13 }
   0x5   :  { %46 = dma.hbm_to_vmem [thread:$0]  %s39_s11, 2048, %s41_s13, [#allocation7], %s1616_s14, %s1616_s14, %s1617_s15  }
   0x6   :  { %s66_s18 = sshll.u32 %s1774_s5, 4  ;;  %s1618_s19 = smov [#allocation9]   ;;  %s67_s18 = int_to_ptr.hbm [resolvable:$true] %s66_s18 }
   0x7   :  { %s68_s20 = sshll.u32 %s1618_s19, 4  ;;  %s25_s22 = sshll.u32 %s1770_s1, 4  ;;  %s69_s20 = int_to_ptr.vmem [resolvable:$true] %s68_s20  ;;  %s26_s22 = int_to_ptr.hbm [resolvable:$true] %s25_s22 }
   0x8   :  { %s1619_s23 = smov 64   ;;  %s1620_s24 = smov 4  }
   0x9   :  { %74 = dma.hbm_to_vmem [thread:$0]  %s67_s18, 1024, %s69_s20, [#allocation10], %s1619_s23, %s1619_s23, %s1620_s24  }
   0xa   :  { %s51_s27 = sshll.u32 %s1772_s3, 4  ;;  %s1621_s28 = smov [#allocation3]   ;;  %s52_s27 = int_to_ptr.hbm [resolvable:$true] %s51_s27 }
   0xb   :  { %s27_s29 = sshll.u32 %s1621_s28, 4  ;;  %s1622_s5 = smov [#allocation8]   ;;  %s28_s29 = int_to_ptr.vmem [resolvable:$true] %s27_s29 }
   0xc   :  { %33 = dma.hbm_to_vmem [thread:$0]  %s26_s22, 1024, %s28_s29, [#allocation4], %s1619_s23, %s1619_s23, %s1620_s24  }
   0xd   :  { %s53_s30 = sshll.u32 %s1622_s5, 4  ;;  %s81_s1 = sshll.u32 %s1776_s7, 4  ;;  %s54_s30 = int_to_ptr.vmem [resolvable:$true] %s53_s30  ;;  %s82_s1 = int_to_ptr.hbm [resolvable:$true] %s81_s1 }
   0xe   :  { %59 = dma.hbm_to_vmem [thread:$0]  %s52_s27, 1024, %s54_s30, [#allocation7], %s1619_s23, %s1619_s23, %s1620_s24  }
   0xf   :  { %s1623_s12 = smov [#allocation11]  }
  0x10   :  { %s83_s13 = sshll.u32 %s1623_s12, 4  ;;  %s84_s13 = int_to_ptr.vmem [resolvable:$true] %s83_s13 }
  0x11   :  { %89 = dma.hbm_to_vmem [thread:$0]  %s82_s1, 1024, %s84_s13, [#allocation10], %s1619_s23, %s1619_s23, %s1620_s24  }
  0x12   :  { %1607 = dma.done.wait [#allocation4], 1024  }
  0x13   :  { %1608 = vsyncadd [#allocation4], 4294966272 }
  0x14   :  { %1609 = dma.done.wait [#allocation7], 3072  }
  0x15   :  { %1610 = vsyncadd [#allocation7], 4294964224 }
  0x16   :  { %1611 = dma.done.wait [#allocation10], 2048  }
  0x17   :  { %1612 = vsyncadd [#allocation10], 4294965248  ;;  %v142_v0 = vld [vmem:[#allocation6 + $0x70] sm:$0xff]  ;;  %v143_v1 = vld [vmem:[#allocation6 + $0x78] sm:$0xff]  ;;  %s1171_s2 = sshll.u32 %s1778_s9, 4  ;;  %s1172_s2 = int_to_ptr.hbm [resolvable:$true] %s1171_s2 }
  0x18   :  { %v140_v2 = vld [vmem:[#allocation6 + $0x60] sm:$0xff]  ;;  %v168_v3 = vpack.c.bf16 %v143_v1, %v142_v0  ;;  %v141_v4 = vld [vmem:[#allocation6 + $0x68] sm:$0xff]  ;;  %v138_v6 = vld [vmem:[#allocation6 + $0x50] sm:$0xff] }
  0x19   :  { %v167_v5 = vpack.c.bf16 %v141_v4, %v140_v2  ;;  %v139_v7 = vld [vmem:[#allocation6 + $0x58] sm:$0xff]  ;;  %v136_v9 = vld [vmem:[#allocation6 + $0x40] sm:$0xff]  ;;  %v137_v10 = vld [vmem:[#allocation6 + $0x48] sm:$0xff] }
  0x1a   :  { %1362 = vmatpush.bf16.msra.mxu3 %v168_v3  ;;  %217 = vmatpush.bf16.msra.mxu0 %v168_v3  ;;  %v166_v8 = vpack.c.bf16 %v139_v7, %v138_v6  ;;  %v165_v11 = vpack.c.bf16 %v137_v10, %v136_v9  ;;  %v134_v12 = vld [vmem:[#allocation6 + $0x30] sm:$0xff]  ;;  %v135_v13 = vld [vmem:[#allocation6 + $0x38] sm:$0xff]  ;;  %v132_v15 = vld [vmem:[#allocation6 + $0x20] sm:$0xff] }
  0x1b   :  { %v164_v14 = vpack.c.bf16 %v135_v13, %v134_v12  ;;  %v133_v16 = vld [vmem:[#allocation6 + $0x28] sm:$0xff]  ;;  %v130_v18 = vld [vmem:[#allocation6 + $0x10] sm:$0xff]  ;;  %v131_v19 = vld [vmem:[#allocation6 + $0x18] sm:$0xff] }
  0x1c   :  { %v163_v17 = vpack.c.bf16 %v133_v16, %v132_v15  ;;  %v162_v20 = vpack.c.bf16 %v131_v19, %v130_v18  ;;  %v128_v21 = vld [vmem:[#allocation6] sm:$0xff]  ;;  %v129_v22 = vld [vmem:[#allocation6 + $0x8] sm:$0xff]  ;;  %v1693_v24 = vld [vmem:[#allocation3 + $0x10] sm:$0xff] }
  0x1d   :  { %v161_v23 = vpack.c.bf16 %v129_v22, %v128_v21  ;;  %v1696_v25 = vld [vmem:[#allocation3 + $0x18] sm:$0xff]  ;;  %v1699_v26 = vld [vmem:[#allocation3 + $0x20] sm:$0xff]  ;;  %v1705_v28 = vld [vmem:[#allocation3 + $0x28] sm:$0xff] }
  0x1e   :  { %1363 = vmatpush.bf16.msra.mxu3 %v167_v5  ;;  %218 = vmatpush.bf16.msra.mxu0 %v167_v5  ;;  %v1702_v27 = vld [vmem:[#allocation3] sm:$0xff]  ;;  %v1708_v29 = vld [vmem:[#allocation3 + $0x8] sm:$0xff]  ;;  %v1345_v30 = vld [vmem:[#allocation8 + $0x38] sm:$0xff] }
  0x1f   :  { %1370 = vmatpush.bf16.msra.mxu1 %v1345_v30  ;;  %v1344_v31 = vld [vmem:[#allocation8 + $0x30] sm:$0xff]  ;;  %v1343_v32 = vld [vmem:[#allocation8 + $0x28] sm:$0xff]  ;;  %v1342_v33 = vld [vmem:[#allocation8 + $0x20] sm:$0xff] }
  0x20   :  { %v1711_v34 = vld [vmem:[#allocation3 + $0x30] sm:$0xff]  ;;  %v1341_v35 = vld [vmem:[#allocation8 + $0x18] sm:$0xff]  ;;  %v1339_v38 = vld [vmem:[#allocation8 + $0x8] sm:$0xff] }
  0x21   :  { %v1714_v36 = vld [vmem:[#allocation3 + $0x38] sm:$0xff]  ;;  %v1340_v37 = vld [vmem:[#allocation8 + $0x10] sm:$0xff]  ;;  %v1338_v39 = vld [vmem:[#allocation8] sm:$0xff] }
  0x22   :  { %1364 = vmatpush.bf16.msra.mxu3 %v166_v8  ;;  %219 = vmatpush.bf16.msra.mxu0 %v166_v8  ;;  %v1396_v12 = vld [vmem:[%s1773_s4] ss:$0 sm:$0xff] }
  0x23   :  { %1371 = vmatpush.bf16.msra.mxu1 %v1344_v31 }
  0x26   :  { %1365 = vmatpush.bf16.msra.mxu3 %v165_v11  ;;  %220 = vmatpush.bf16.msra.mxu0 %v165_v11 }
  0x27   :  { %1372 = vmatpush.bf16.msra.mxu1 %v1343_v32 }
  0x2a   :  { %1366 = vmatpush.bf16.msra.mxu3 %v164_v14  ;;  %221 = vmatpush.bf16.msra.mxu0 %v164_v14 }
  0x2b   :  { %1373 = vmatpush.bf16.msra.mxu1 %v1342_v33 }
  0x2e   :  { %1367 = vmatpush.bf16.msra.mxu3 %v163_v17  ;;  %222 = vmatpush.bf16.msra.mxu0 %v163_v17 }
  0x2f   :  { %1374 = vmatpush.bf16.msra.mxu1 %v1341_v35 }
  0x32   :  { %1368 = vmatpush.bf16.msra.mxu3 %v162_v20  ;;  %223 = vmatpush.bf16.msra.mxu0 %v162_v20 }
  0x33   :  { %1375 = vmatpush.bf16.msra.mxu1 %v1340_v37 }
  0x36   :  { %1369 = vmatpush.bf16.msra.mxu3 %v161_v23  ;;  %224 = vmatpush.bf16.msra.mxu0 %v161_v23 }
  0x37   :  { %1376 = vmatpush.bf16.msra.mxu1 %v1339_v38 }
  0x39   :  { %235 = vmatmul.bf16.vlgmr.msra.gmra.mxu3 %v1693_v24  ;;  %225 = vmatmul.bf16.vlgmr.msra.gmra.mxu0 %v1702_v27 }
  0x3a   :  { %325 = vmatpush.bf16.msrb.mxu0 %v1345_v30 }
  0x3b   :  { %1377 = vmatpush.bf16.msra.mxu1 %v1338_v39 }
  0x3e   :  { %326 = vmatpush.bf16.msrb.mxu0 %v1344_v31 }
  0x42   :  { %327 = vmatpush.bf16.msrb.mxu0 %v1343_v32 }
  0x46   :  { %328 = vmatpush.bf16.msrb.mxu0 %v1342_v33 }
  0x49   :  { %240 = vmatmul.bf16.gmra.mxu3 %v1696_v25  ;;  %230 = vmatmul.bf16.gmra.mxu0 %v1708_v29 }
  0x4a   :  { %329 = vmatpush.bf16.msrb.mxu0 %v1341_v35 }
  0x4e   :  { %330 = vmatpush.bf16.msrb.mxu0 %v1340_v37 }
  0x52   :  { %331 = vmatpush.bf16.msrb.mxu0 %v1339_v38 }
  0x56   :  { %332 = vmatpush.bf16.msrb.mxu0 %v1338_v39 }
  0x59   :  { %245 = vmatmul.bf16.gmra.mxu3 %v1699_v26 }
  0x69   :  { %250 = vmatmul.bf16.gmra.mxu3 %v1705_v28 }
  0x79   :  { %255 = vmatmul.bf16.gmra.mxu3 %v1711_v34 }
  0x89   :  { %260 = vmatmul.bf16.gmra.mxu3 %v1714_v36 }
  0xb6   :  { %v226_v47 = vpop.f32.mrf.mxu0 }
  0xbc   :  { %v236_v40 = vpop.f32.mrf.mxu3 }
  0xbe   :  { %v228_v50 = vpop.f32.mrf.mxu0 }
  0xbf   :  { %v266_v51 = vpack.c.bf16 %v228_v50, %v226_v47 }
  0xc1   :  { %333 = vmatmul.bf16.vlgmr.msrb.gmra.mxu0 %v266_v51 }
  0xc4   :  { %v238_v41 = vpop.f32.mrf.mxu3 }
  0xc5   :  { %v268_v42 = vpack.c.bf16 %v238_v41, %v236_v40 }
  0xc6   :  { %v231_v53 = vpop.f32.mrf.mxu0 }
  0xc7   :  { %343 = vmatmul.bf16.vlgmr.msra.gmra.mxu1 %v268_v42 }
  0xcc   :  { %v241_v43 = vpop.f32.mrf.mxu3 }
  0xce   :  { %v233_v56 = vpop.f32.mrf.mxu0 }
  0xcf   :  { %v267_v57 = vpack.c.bf16 %v233_v56, %v231_v53 }
  0xd1   :  { %338 = vmatmul.bf16.gmra.mxu0 %v267_v57 }
  0xd4   :  { %v243_v44 = vpop.f32.mrf.mxu3 }
  0xd5   :  { %v269_v45 = vpack.c.bf16 %v243_v44, %v241_v43 }
  0xd7   :  { %348 = vmatmul.bf16.gmra.mxu1 %v269_v45 }
  0xdc   :  { %v246_v46 = vpop.f32.mrf.mxu3 }
  0xe4   :  { %v248_v48 = vpop.f32.mrf.mxu3 }
  0xe5   :  { %v270_v49 = vpack.c.bf16 %v248_v48, %v246_v46 }
  0xe7   :  { %353 = vmatmul.bf16.gmra.mxu1 %v270_v49 }
  0xec   :  { %v251_v52 = vpop.f32.mrf.mxu3 }
  0xf4   :  { %v253_v54 = vpop.f32.mrf.mxu3 }
  0xf5   :  { %v271_v55 = vpack.c.bf16 %v253_v54, %v251_v52 }
  0xf7   :  { %358 = vmatmul.bf16.gmra.mxu1 %v271_v55 }
  0xfc   :  { %v256_v58 = vpop.f32.mrf.mxu3 }
 0x104   :  { %v258_v59 = vpop.f32.mrf.mxu3 }
 0x105   :  { %v272_v60 = vpack.c.bf16 %v258_v59, %v256_v58 }
 0x107   :  { %363 = vmatmul.bf16.gmra.mxu1 %v272_v60 }
 0x10c   :  { %v261_v61 = vpop.f32.mrf.mxu3 }
 0x114   :  { %v263_v62 = vpop.f32.mrf.mxu3 }
 0x115   :  { %v273_v63 = vpack.c.bf16 %v263_v62, %v261_v61 }
 0x117   :  { %368 = vmatmul.bf16.gmra.mxu1 %v273_v63 }
 0x13e   :  { %v334_v10 = vpop.f32.mrf.mxu0 }
 0x13f   :  { %v335_v57 = vadd.f32 %v1396_v12, %v334_v10 }
 0x141   :  { %v374_v61 = vmax.f32 %v335_v57, 0.0 }
 0x144   :  { %v344_v0 = vpop.f32.mrf.mxu1 }
 0x145   :  { %v345_v48 = vadd.f32 %v1396_v12, %v344_v0 }
 0x146   :  { %v336_v13 = vpop.f32.mrf.mxu0 }
 0x147   :  { %v378_v55 = vmax.f32 %v345_v48, 0.0  ;;  %v337_v58 = vadd.f32 %v1396_v12, %v336_v13 }
 0x149   :  { %v375_v62 = vmax.f32 %v337_v58, 0.0 }
 0x14b   :  { %v407_v0 = vpack.c.bf16 %v375_v62, %v374_v61 }
 0x14c   :  { %v346_v1 = vpop.f32.mrf.mxu1 }
 0x14d   :  { %v347_v45 = vadd.f32 %v1396_v12, %v346_v1  ;;  %v1353_v1 = vld [vmem:[#allocation9 + $0x38] sm:$0xff] }
 0x14e   :  { %v339_v32 = vpop.f32.mrf.mxu0  ;;  %523 = vmatpush.bf16.msrb.mxu3 %v1353_v1 }
 0x14f   :  { %v379_v51 = vmax.f32 %v347_v45, 0.0  ;;  %v340_v52 = vadd.f32 %v1396_v12, %v339_v32 }
 0x151   :  { %v409_v56 = vpack.c.bf16 %v379_v51, %v378_v55  ;;  %v376_v59 = vmax.f32 %v340_v52, 0.0 }
 0x154   :  { %v349_v2 = vpop.f32.mrf.mxu1 }
 0x155   :  { %v350_v43 = vadd.f32 %v1396_v12, %v349_v2  ;;  %v1352_v2 = vld [vmem:[#allocation9 + $0x30] sm:$0xff] }
 0x156   :  { %v341_v49 = vpop.f32.mrf.mxu0  ;;  %524 = vmatpush.bf16.msrb.mxu3 %v1352_v2 }
 0x157   :  { %v380_v50 = vmax.f32 %v350_v43, 0.0  ;;  %v342_v53 = vadd.f32 %v1396_v12, %v341_v49 }
 0x159   :  { %v377_v60 = vmax.f32 %v342_v53, 0.0 }
 0x15b   :  { %v408_v63 = vpack.c.bf16 %v377_v60, %v376_v59 }
 0x15c   :  { %v351_v3 = vpop.f32.mrf.mxu1 }
 0x15d   :  { %v352_v40 = vadd.f32 %v1396_v12, %v351_v3  ;;  %v1351_v3 = vld [vmem:[#allocation9 + $0x28] sm:$0xff] }
 0x15e   :  { %525 = vmatpush.bf16.msrb.mxu3 %v1351_v3 }
 0x15f   :  { %v381_v46 = vmax.f32 %v352_v40, 0.0 }
 0x161   :  { %v410_v54 = vpack.c.bf16 %v381_v46, %v380_v50 }
 0x164   :  { %v354_v4 = vpop.f32.mrf.mxu1 }
 0x165   :  { %v355_v38 = vadd.f32 %v1396_v12, %v354_v4  ;;  %v1350_v4 = vld [vmem:[#allocation9 + $0x20] sm:$0xff] }
 0x166   :  { %526 = vmatpush.bf16.msrb.mxu3 %v1350_v4 }
 0x167   :  { %v382_v44 = vmax.f32 %v355_v38, 0.0 }
 0x16c   :  { %v356_v5 = vpop.f32.mrf.mxu1 }
 0x16d   :  { %v357_v33 = vadd.f32 %v1396_v12, %v356_v5  ;;  %v1349_v5 = vld [vmem:[#allocation9 + $0x18] sm:$0xff] }
 0x16e   :  { %527 = vmatpush.bf16.msrb.mxu3 %v1349_v5 }
 0x16f   :  { %v383_v41 = vmax.f32 %v357_v33, 0.0 }
 0x171   :  { %v411_v47 = vpack.c.bf16 %v383_v41, %v382_v44 }
 0x174   :  { %v359_v6 = vpop.f32.mrf.mxu1 }
 0x175   :  { %v360_v30 = vadd.f32 %v1396_v12, %v359_v6  ;;  %v1348_v6 = vld [vmem:[#allocation9 + $0x10] sm:$0xff] }
 0x176   :  { %528 = vmatpush.bf16.msrb.mxu3 %v1348_v6 }
 0x177   :  { %v384_v39 = vmax.f32 %v360_v30, 0.0 }
 0x17c   :  { %v361_v7 = vpop.f32.mrf.mxu1 }
 0x17d   :  { %v362_v21 = vadd.f32 %v1396_v12, %v361_v7  ;;  %v1347_v7 = vld [vmem:[#allocation9 + $0x8] sm:$0xff] }
 0x17e   :  { %529 = vmatpush.bf16.msrb.mxu3 %v1347_v7 }
 0x17f   :  { %v385_v35 = vmax.f32 %v362_v21, 0.0 }
 0x181   :  { %v412_v42 = vpack.c.bf16 %v385_v35, %v384_v39 }
 0x184   :  { %v364_v8 = vpop.f32.mrf.mxu1 }
 0x185   :  { %v365_v18 = vadd.f32 %v1396_v12, %v364_v8  ;;  %v1346_v8 = vld [vmem:[#allocation9] sm:$0xff] }
 0x186   :  { %530 = vmatpush.bf16.msrb.mxu3 %v1346_v8 }
 0x187   :  { %v386_v31 = vmax.f32 %v365_v18, 0.0 }
 0x18c   :  { %v366_v9 = vpop.f32.mrf.mxu1 }
 0x18d   :  { %v367_v16 = vadd.f32 %v1396_v12, %v366_v9 }
 0x18f   :  { %v387_v22 = vmax.f32 %v367_v16, 0.0 }
 0x191   :  { %v413_v37 = vpack.c.bf16 %v387_v22, %v386_v31 }
 0x194   :  { %v369_v11 = vpop.f32.mrf.mxu1 }
 0x195   :  { %v370_v14 = vadd.f32 %v1396_v12, %v369_v11 }
 0x197   :  { %v388_v19 = vmax.f32 %v370_v14, 0.0 }
 0x19c   :  { %v371_v15 = vpop.f32.mrf.mxu1 }
 0x19d   :  { %v372_v17 = vadd.f32 %v1396_v12, %v371_v15 }
 0x19f   :  { %v389_v20 = vmax.f32 %v372_v17, 0.0 }
 0x1a1   :  { %v414_v23 = vpack.c.bf16 %v389_v20, %v388_v19 }
 0x1a3   :  { %415 = vmatpush.bf16.msra.mxu0 %v414_v23  ;;  %1378 = vmatpush.bf16.msra.mxu2 %v414_v23 }
 0x1a7   :  { %416 = vmatpush.bf16.msra.mxu0 %v413_v37  ;;  %1379 = vmatpush.bf16.msra.mxu2 %v413_v37 }
 0x1ab   :  { %417 = vmatpush.bf16.msra.mxu0 %v412_v42  ;;  %1380 = vmatpush.bf16.msra.mxu2 %v412_v42  ;;  %v1397_v42 = vld [vmem:[%s1775_s6] ss:$0 sm:$0xff] }
 0x1af   :  { %418 = vmatpush.bf16.msra.mxu0 %v411_v47  ;;  %1381 = vmatpush.bf16.msra.mxu2 %v411_v47 }
 0x1b3   :  { %419 = vmatpush.bf16.msra.mxu0 %v410_v54  ;;  %1382 = vmatpush.bf16.msra.mxu2 %v410_v54 }
 0x1b7   :  { %420 = vmatpush.bf16.msra.mxu0 %v409_v56  ;;  %1383 = vmatpush.bf16.msra.mxu2 %v409_v56 }
 0x1bb   :  { %421 = vmatpush.bf16.msra.mxu0 %v408_v63  ;;  %1384 = vmatpush.bf16.msra.mxu2 %v408_v63 }
 0x1bf   :  { %422 = vmatpush.bf16.msra.mxu0 %v407_v0  ;;  %1385 = vmatpush.bf16.msra.mxu2 %v407_v0 }
 0x1c2   :  { %423 = vmatmul.bf16.vlgmr.msra.gmra.mxu0 %v1702_v27  ;;  %433 = vmatmul.bf16.vlgmr.msra.gmra.mxu2 %v1693_v24 }
 0x1d2   :  { %428 = vmatmul.bf16.gmra.mxu0 %v1708_v29  ;;  %438 = vmatmul.bf16.gmra.mxu2 %v1696_v25 }
 0x1e2   :  { %443 = vmatmul.bf16.gmra.mxu2 %v1699_v26 }
 0x1f2   :  { %448 = vmatmul.bf16.gmra.mxu2 %v1705_v28 }
 0x202   :  { %453 = vmatmul.bf16.gmra.mxu2 %v1711_v34 }
 0x212   :  { %458 = vmatmul.bf16.gmra.mxu2 %v1714_v36 }
 0x23f   :  { %v424_v9 = vpop.f32.mrf.mxu0 }
 0x245   :  { %v434_v11 = vpop.f32.mrf.mxu2 }
 0x247   :  { %v426_v10 = vpop.f32.mrf.mxu0 }
 0x248   :  { %v464_v12 = vpack.c.bf16 %v426_v10, %v424_v9 }
 0x24a   :  { %531 = vmatmul.bf16.vlgmr.msrb.gmra.mxu3 %v464_v12 }
 0x24d   :  { %v436_v14 = vpop.f32.mrf.mxu2 }
 0x24e   :  { %v466_v19 = vpack.c.bf16 %v436_v14, %v434_v11 }
 0x24f   :  { %v429_v13 = vpop.f32.mrf.mxu0 }
 0x255   :  { %v439_v17 = vpop.f32.mrf.mxu2 }
 0x257   :  { %v431_v15 = vpop.f32.mrf.mxu0 }
 0x258   :  { %v465_v16 = vpack.c.bf16 %v431_v15, %v429_v13 }
 0x25a   :  { %536 = vmatmul.bf16.gmra.mxu3 %v465_v16 }
 0x25d   :  { %v441_v18 = vpop.f32.mrf.mxu2 }
 0x25e   :  { %v467_v21 = vpack.c.bf16 %v441_v18, %v439_v17 }
 0x265   :  { %v444_v20 = vpop.f32.mrf.mxu2 }
 0x26a   :  { %541 = vmatmul.bf16.gmra.mxu3 %v466_v19 }
 0x26d   :  { %v446_v22 = vpop.f32.mrf.mxu2 }
 0x26e   :  { %v468_v30 = vpack.c.bf16 %v446_v22, %v444_v20 }
 0x275   :  { %v449_v23 = vpop.f32.mrf.mxu2 }
 0x27a   :  { %546 = vmatmul.bf16.gmra.mxu3 %v467_v21 }
 0x27d   :  { %v451_v31 = vpop.f32.mrf.mxu2 }
 0x27e   :  { %v469_v33 = vpack.c.bf16 %v451_v31, %v449_v23 }
 0x285   :  { %v454_v32 = vpop.f32.mrf.mxu2 }
 0x28a   :  { %551 = vmatmul.bf16.gmra.mxu3 %v468_v30 }
 0x28d   :  { %v456_v35 = vpop.f32.mrf.mxu2 }
 0x28e   :  { %v470_v37 = vpack.c.bf16 %v456_v35, %v454_v32 }
 0x295   :  { %v459_v38 = vpop.f32.mrf.mxu2 }
 0x29a   :  { %556 = vmatmul.bf16.gmra.mxu3 %v469_v33 }
 0x29d   :  { %v461_v39 = vpop.f32.mrf.mxu2 }
 0x29e   :  { %v471_v40 = vpack.c.bf16 %v461_v39, %v459_v38 }
 0x2aa   :  { %561 = vmatmul.bf16.gmra.mxu3 %v470_v37 }
 0x2ba   :  { %566 = vmatmul.bf16.gmra.mxu3 %v471_v40 }
 0x2cd   :  { %v532_v41 = vpop.f32.mrf.mxu3 }
 0x2ce   :  { %v533_v43 = vadd.f32 %v1397_v42, %v532_v41 }
 0x2d0   :  { %v572_v46 = vmax.f32 %v533_v43, 0.0  ;;  %v1361_v43 = vld [vmem:[#allocation11 + $0x38] sm:$0xff] }
 0x2d1   :  { %721 = vmatpush.bf16.msrb.mxu1 %v1361_v43 }
 0x2d5   :  { %v534_v44 = vpop.f32.mrf.mxu3 }
 0x2d6   :  { %v535_v45 = vadd.f32 %v1397_v42, %v534_v44  ;;  %v1359_v44 = vld [vmem:[#allocation11 + $0x28] sm:$0xff] }
 0x2d8   :  { %v573_v47 = vmax.f32 %v535_v45, 0.0  ;;  %v1358_v45 = vld [vmem:[#allocation11 + $0x20] sm:$0xff] }
 0x2da   :  { %v605_v48 = vpack.c.bf16 %v573_v47, %v572_v46  ;;  %v1357_v46 = vld [vmem:[#allocation11 + $0x18] sm:$0xff] }
 0x2dd   :  { %v537_v49 = vpop.f32.mrf.mxu3 }
 0x2de   :  { %v538_v50 = vadd.f32 %v1397_v42, %v537_v49 }
 0x2e0   :  { %v574_v53 = vmax.f32 %v538_v50, 0.0 }
 0x2e5   :  { %v539_v51 = vpop.f32.mrf.mxu3 }
 0x2e6   :  { %v540_v52 = vadd.f32 %v1397_v42, %v539_v51 }
 0x2e8   :  { %v575_v54 = vmax.f32 %v540_v52, 0.0 }
 0x2ea   :  { %v606_v55 = vpack.c.bf16 %v575_v54, %v574_v53 }
 0x2ed   :  { %v542_v56 = vpop.f32.mrf.mxu3 }
 0x2ee   :  { %v543_v57 = vadd.f32 %v1397_v42, %v542_v56 }
 0x2f0   :  { %v576_v60 = vmax.f32 %v543_v57, 0.0 }
 0x2f5   :  { %v544_v58 = vpop.f32.mrf.mxu3 }
 0x2f6   :  { %v545_v59 = vadd.f32 %v1397_v42, %v544_v58 }
 0x2f8   :  { %v577_v61 = vmax.f32 %v545_v59, 0.0 }
 0x2fa   :  { %v607_v62 = vpack.c.bf16 %v577_v61, %v576_v60 }
 0x2fd   :  { %v547_v63 = vpop.f32.mrf.mxu3 }
 0x2fe   :  { %v548_v0 = vadd.f32 %v1397_v42, %v547_v63 }
 0x300   :  { %v578_v3 = vmax.f32 %v548_v0, 0.0 }
 0x305   :  { %v549_v1 = vpop.f32.mrf.mxu3 }
 0x306   :  { %v550_v2 = vadd.f32 %v1397_v42, %v549_v1 }
 0x308   :  { %v579_v4 = vmax.f32 %v550_v2, 0.0 }
 0x30a   :  { %v608_v5 = vpack.c.bf16 %v579_v4, %v578_v3  ;;  %v1398_v3 = vld [vmem:[%s1777_s8] ss:$0 sm:$0xff] }
 0x30d   :  { %v552_v6 = vpop.f32.mrf.mxu3 }
 0x30e   :  { %v553_v35 = vadd.f32 %v1397_v42, %v552_v6 }
 0x310   :  { %v580_v40 = vmax.f32 %v553_v35, 0.0 }
 0x315   :  { %v554_v7 = vpop.f32.mrf.mxu3 }
 0x316   :  { %v555_v31 = vadd.f32 %v1397_v42, %v554_v7 }
 0x318   :  { %v581_v38 = vmax.f32 %v555_v31, 0.0 }
 0x31a   :  { %v609_v41 = vpack.c.bf16 %v581_v38, %v580_v40 }
 0x31d   :  { %v557_v8 = vpop.f32.mrf.mxu3 }
 0x31e   :  { %v558_v23 = vadd.f32 %v1397_v42, %v557_v8 }
 0x320   :  { %v582_v37 = vmax.f32 %v558_v23, 0.0 }
 0x325   :  { %v559_v9 = vpop.f32.mrf.mxu3 }
 0x326   :  { %v560_v20 = vadd.f32 %v1397_v42, %v559_v9 }
 0x328   :  { %v583_v32 = vmax.f32 %v560_v20, 0.0 }
 0x32a   :  { %v610_v39 = vpack.c.bf16 %v583_v32, %v582_v37 }
 0x32d   :  { %v562_v10 = vpop.f32.mrf.mxu3 }
 0x32e   :  { %v563_v17 = vadd.f32 %v1397_v42, %v562_v10 }
 0x330   :  { %v584_v30 = vmax.f32 %v563_v17, 0.0 }
 0x335   :  { %v564_v11 = vpop.f32.mrf.mxu3 }
 0x336   :  { %v565_v15 = vadd.f32 %v1397_v42, %v564_v11 }
 0x338   :  { %v585_v21 = vmax.f32 %v565_v15, 0.0 }
 0x33a   :  { %v611_v33 = vpack.c.bf16 %v585_v21, %v584_v30 }
 0x33d   :  { %v567_v12 = vpop.f32.mrf.mxu3 }
 0x33e   :  { %v568_v13 = vadd.f32 %v1397_v42, %v567_v12 }
 0x340   :  { %v586_v18 = vmax.f32 %v568_v13, 0.0 }
 0x345   :  { %v569_v14 = vpop.f32.mrf.mxu3 }
 0x346   :  { %v570_v16 = vadd.f32 %v1397_v42, %v569_v14  ;;  %v1360_v42 = vld [vmem:[#allocation11 + $0x30] sm:$0xff] }
 0x347   :  { %722 = vmatpush.bf16.msrb.mxu1 %v1360_v42 }
 0x348   :  { %v587_v19 = vmax.f32 %v570_v16, 0.0 }
 0x34a   :  { %v612_v22 = vpack.c.bf16 %v587_v19, %v586_v18 }
 0x34b   :  { %723 = vmatpush.bf16.msrb.mxu1 %v1359_v44 }
 0x34c   :  { %613 = vmatpush.bf16.msrb.mxu0 %v612_v22 }
 0x34f   :  { %724 = vmatpush.bf16.msrb.mxu1 %v1358_v45 }
 0x350   :  { %614 = vmatpush.bf16.msrb.mxu0 %v611_v33 }
 0x353   :  { %725 = vmatpush.bf16.msrb.mxu1 %v1357_v46 }
 0x354   :  { %615 = vmatpush.bf16.msrb.mxu0 %v610_v39 }
 0x358   :  { %616 = vmatpush.bf16.msrb.mxu0 %v609_v41 }
 0x35c   :  { %617 = vmatpush.bf16.msrb.mxu0 %v608_v5 }
 0x360   :  { %618 = vmatpush.bf16.msrb.mxu0 %v607_v62 }
 0x364   :  { %619 = vmatpush.bf16.msrb.mxu0 %v606_v55 }
 0x368   :  { %620 = vmatpush.bf16.msrb.mxu0 %v605_v48 }
 0x36b   :  { %621 = vmatmul.bf16.vlgmr.msrb.gmra.mxu0 %v1702_v27  ;;  %v1356_v27 = vld [vmem:[#allocation11 + $0x10] sm:$0xff] }
 0x36c   :  { %726 = vmatpush.bf16.msrb.mxu1 %v1356_v27 }
 0x37b   :  { %626 = vmatmul.bf16.gmra.mxu0 %v1708_v29  ;;  %v1355_v29 = vld [vmem:[#allocation11 + $0x8] sm:$0xff] }
 0x37c   :  { %727 = vmatpush.bf16.msrb.mxu1 %v1355_v29 }
 0x38b   :  { %631 = vmatmul.bf16.gmra.mxu0 %v1693_v24  ;;  %v1354_v24 = vld [vmem:[#allocation11] sm:$0xff] }
 0x38c   :  { %728 = vmatpush.bf16.msrb.mxu1 %v1354_v24 }
 0x39b   :  { %636 = vmatmul.bf16.gmra.mxu0 %v1696_v25 }
 0x3ab   :  { %641 = vmatmul.bf16.gmra.mxu0 %v1699_v26 }
 0x3bb   :  { %646 = vmatmul.bf16.gmra.mxu0 %v1705_v28 }
 0x3cb   :  { %651 = vmatmul.bf16.gmra.mxu0 %v1711_v34 }
 0x3db   :  { %656 = vmatmul.bf16.gmra.mxu0 %v1714_v36 }
 0x3e8   :  { %v622_v25 = vpop.f32.mrf.mxu0 }
 0x3f0   :  { %v624_v26 = vpop.f32.mrf.mxu0 }
 0x3f1   :  { %v662_v47 = vpack.c.bf16 %v624_v26, %v622_v25 }
 0x3f3   :  { %729 = vmatmul.bf16.vlgmr.msrb.gmra.mxu1 %v662_v47 }
 0x3f8   :  { %v627_v48 = vpop.f32.mrf.mxu0 }
 0x400   :  { %v629_v49 = vpop.f32.mrf.mxu0 }
 0x401   :  { %v663_v50 = vpack.c.bf16 %v629_v49, %v627_v48 }
 0x403   :  { %734 = vmatmul.bf16.gmra.mxu1 %v663_v50 }
 0x408   :  { %v632_v28 = vpop.f32.mrf.mxu0 }
 0x410   :  { %v634_v51 = vpop.f32.mrf.mxu0 }
 0x411   :  { %v664_v52 = vpack.c.bf16 %v634_v51, %v632_v28 }
 0x413   :  { %739 = vmatmul.bf16.gmra.mxu1 %v664_v52 }
 0x418   :  { %v637_v53 = vpop.f32.mrf.mxu0 }
 0x420   :  { %v639_v54 = vpop.f32.mrf.mxu0 }
 0x421   :  { %v665_v34 = vpack.c.bf16 %v639_v54, %v637_v53 }
 0x423   :  { %744 = vmatmul.bf16.gmra.mxu1 %v665_v34 }
 0x428   :  { %v642_v55 = vpop.f32.mrf.mxu0 }
 0x430   :  { %v644_v56 = vpop.f32.mrf.mxu0 }
 0x431   :  { %v666_v57 = vpack.c.bf16 %v644_v56, %v642_v55 }
 0x433   :  { %749 = vmatmul.bf16.gmra.mxu1 %v666_v57 }
 0x438   :  { %v647_v36 = vpop.f32.mrf.mxu0 }
 0x440   :  { %v649_v58 = vpop.f32.mrf.mxu0 }
 0x441   :  { %v667_v59 = vpack.c.bf16 %v649_v58, %v647_v36 }
 0x443   :  { %754 = vmatmul.bf16.gmra.mxu1 %v667_v59 }
 0x448   :  { %v652_v60 = vpop.f32.mrf.mxu0 }
 0x450   :  { %v654_v61 = vpop.f32.mrf.mxu0 }
 0x451   :  { %v668_v62 = vpack.c.bf16 %v654_v61, %v652_v60 }
 0x453   :  { %759 = vmatmul.bf16.gmra.mxu1 %v668_v62 }
 0x458   :  { %v657_v63 = vpop.f32.mrf.mxu0 }
 0x460   :  { %v659_v0 = vpop.f32.mrf.mxu0 }
 0x461   :  { %v669_v1 = vpack.c.bf16 %v659_v0, %v657_v63 }
 0x463   :  { %764 = vmatmul.bf16.gmra.mxu1 %v669_v1  ;;  %v1745_v1 = vstv %s1769_s0  ;;  %s1624_s0 = smov [#allocation12]  }
 0x464   :  { %s1169_s19 = sshll.u32 %s1624_s0, 4  ;;  %s1170_s19 = int_to_ptr.vmem [resolvable:$true] %s1169_s19 }
 0x470   :  { %v730_v2 = vpop.f32.mrf.mxu1 }
 0x471   :  { %v731_v5 = vadd.f32 %v1398_v3, %v730_v2 }
 0x478   :  { %v732_v4 = vpop.f32.mrf.mxu1 }
 0x479   :  { %v733_v6 = vadd.f32 %v1398_v3, %v732_v4 }
 0x47b   :  { %v770_v7 = vpack.c.bf16 %v733_v6, %v731_v5 }
 0x480   :  { %v735_v8 = vpop.f32.mrf.mxu1 }
 0x481   :  { %v736_v10 = vadd.f32 %v1398_v3, %v735_v8 }
 0x488   :  { %v737_v9 = vpop.f32.mrf.mxu1 }
 0x489   :  { %v738_v11 = vadd.f32 %v1398_v3, %v737_v9 }
 0x48b   :  { %v771_v12 = vpack.c.bf16 %v738_v11, %v736_v10 }
 0x490   :  { %v740_v13 = vpop.f32.mrf.mxu1 }
 0x491   :  { %v741_v15 = vadd.f32 %v1398_v3, %v740_v13 }
 0x498   :  { %v742_v14 = vpop.f32.mrf.mxu1 }
 0x499   :  { %v743_v16 = vadd.f32 %v1398_v3, %v742_v14 }
 0x49b   :  { %v772_v17 = vpack.c.bf16 %v743_v16, %v741_v15 }
 0x4a0   :  { %v745_v18 = vpop.f32.mrf.mxu1 }
 0x4a1   :  { %v746_v20 = vadd.f32 %v1398_v3, %v745_v18 }
 0x4a8   :  { %v747_v19 = vpop.f32.mrf.mxu1 }
 0x4a9   :  { %v748_v21 = vadd.f32 %v1398_v3, %v747_v19 }
 0x4ab   :  { %v773_v22 = vpack.c.bf16 %v748_v21, %v746_v20 }
 0x4b0   :  { %v750_v23 = vpop.f32.mrf.mxu1 }
 0x4b1   :  { %v751_v31 = vadd.f32 %v1398_v3, %v750_v23 }
 0x4b8   :  { %v752_v30 = vpop.f32.mrf.mxu1 }
 0x4b9   :  { %v753_v32 = vadd.f32 %v1398_v3, %v752_v30 }
 0x4bb   :  { %v774_v33 = vpack.c.bf16 %v753_v32, %v751_v31 }
 0x4c0   :  { %v755_v35 = vpop.f32.mrf.mxu1 }
 0x4c1   :  { %v756_v24 = vadd.f32 %v1398_v3, %v755_v35 }
 0x4c8   :  { %v757_v37 = vpop.f32.mrf.mxu1 }
 0x4c9   :  { %v758_v29 = vadd.f32 %v1398_v3, %v757_v37 }
 0x4cb   :  { %v775_v25 = vpack.c.bf16 %v758_v29, %v756_v24 }
 0x4d0   :  { %v760_v38 = vpop.f32.mrf.mxu1 }
 0x4d1   :  { %v761_v46 = vadd.f32 %v1398_v3, %v760_v38 }
 0x4d8   :  { %v762_v39 = vpop.f32.mrf.mxu1 }
 0x4d9   :  { %v763_v45 = vadd.f32 %v1398_v3, %v762_v39 }
 0x4db   :  { %v776_v27 = vpack.c.bf16 %v763_v45, %v761_v46 }
 0x4e0   :  { %v765_v40 = vpop.f32.mrf.mxu1 }
 0x4e1   :  { %v766_v43 = vadd.f32 %v1398_v3, %v765_v40 }
 0x4e8   :  { %v767_v41 = vpop.f32.mrf.mxu1 }
 0x4e9   :  { %v768_v42 = vadd.f32 %v1398_v3, %v767_v41 }
 0x4eb   :  { %v777_v44 = vpack.c.bf16 %v768_v42, %v766_v43 }
 0x4ed   :  { %778 = vmatpush.bf16.xpose.msrb.mxu2 %v777_v44 }
 0x4f5   :  { %779 = vmatpush.bf16.xpose.msrb.mxu2 %v776_v27 }
 0x4fd   :  { %780 = vmatpush.bf16.xpose.msrb.mxu2 %v775_v25 }
 0x505   :  { %781 = vmatpush.bf16.xpose.msrb.mxu2 %v774_v33 }
 0x50d   :  { %782 = vmatpush.bf16.xpose.msrb.mxu2 %v773_v22 }
 0x515   :  { %783 = vmatpush.bf16.xpose.msrb.mxu2 %v772_v17 }
 0x51d   :  { %784 = vmatpush.bf16.xpose.msrb.mxu2 %v771_v12 }
 0x525   :  { %785 = vmatpush.bf16.xpose.msrb.mxu2 %v770_v7 }
 0x52c   :  { %786 = vmatmul.bf16.vlgmr.msrb.gmra.mxu2 %v770_v7 }
 0x53c   :  { %791 = vmatmul.bf16.gmra.mxu2 %v771_v12 }
 0x54c   :  { %796 = vmatmul.bf16.gmra.mxu2 %v772_v17 }
 0x55c   :  { %801 = vmatmul.bf16.gmra.mxu2 %v773_v22 }
 0x56c   :  { %806 = vmatmul.bf16.gmra.mxu2 %v774_v33 }
 0x57c   :  { %811 = vmatmul.bf16.gmra.mxu2 %v775_v25 }
 0x58c   :  { %816 = vmatmul.bf16.gmra.mxu2 %v776_v27 }
 0x59c   :  { %821 = vmatmul.bf16.gmra.mxu2 %v777_v44 }
 0x5af   :  { %v787_v26 = vpop.f32.mrf.mxu2 }
 0x5b0   :  { %v1314_v47 = vmul.f32 -1.442695, %v787_v26 }
 0x5b2   :  { %1399 = vpow2.f32 %v1314_v47 }
 0x5b7   :  { %v789_v48 = vpop.f32.mrf.mxu2 }
 0x5b8   :  { %v1400_v49 = vpop.eup %1399  ;;  %v1315_v50 = vmul.f32 -1.442695, %v789_v48 }
 0x5b9   :  { %v876_v28 = vadd.f32 1.0, %v1400_v49 }
 0x5ba   :  { %1401 = vpow2.f32 %v1315_v50 }
 0x5bb   :  { %1403 = vrcp.f32 %v876_v28  ;;  %v903_v57 = vand.u32 2147483648, %v876_v28  ;;  %v901_v58 = vand.u32 2147483647, %v876_v28  ;;  %vm897_vm1 = vweird.f32 %v876_v28 }
 0x5bd   :  { %v904_v0 = vor.u32 1.1754944e-38, %v903_v57  ;;  %vm902_vm3 = vcmp.eq.f32.partialorder %v901_v58, 8.507059e+37 }
 0x5bf   :  { %v792_v51 = vpop.f32.mrf.mxu2 }
 0x5c0   :  { %v1402_v52 = vpop.eup %1401  ;;  %v1316_v53 = vmul.f32 -1.442695, %v792_v51 }
 0x5c1   :  { %v1404_v54 = vpop.eup %1403  ;;  %v877_v34 = vadd.f32 1.0, %v1402_v52 }
 0x5c2   :  { %v893_v55 = vmul.f32 %v1404_v54, %v876_v28  ;;  %1405 = vpow2.f32 %v1316_v53  ;;  %vm898_vm0 = vweird.f32 %v1404_v54 }
 0x5c3   :  { %1407 = vrcp.f32 %v877_v34  ;;  %vm899_vm2 = vmor %vm897_vm1, %vm898_vm0  ;;  %v918_v8 = vand.u32 2147483648, %v877_v34  ;;  %v916_v10 = vand.u32 2147483647, %v877_v34  ;;  %vm912_vm5 = vweird.f32 %v877_v34 }
 0x5c4   :  { %v894_v56 = vsub.f32 1.0, %v893_v55 }
 0x5c5   :  { %v919_v16 = vor.u32 1.1754944e-38, %v918_v8  ;;  %vm917_vm7 = vcmp.eq.f32.partialorder %v916_v10, 8.507059e+37 }
 0x5c6   :  { %v895_v36 = vmul.f32 %v1404_v54, %v894_v56 }
 0x5c7   :  { %v794_v59 = vpop.f32.mrf.mxu2 }
 0x5c8   :  { %v1406_v60 = vpop.eup %1405  ;;  %v896_v61 = vadd.f32 %v1404_v54, %v895_v36  ;;  %v1317_v62 = vmul.f32 -1.442695, %v794_v59 }
 0x5c9   :  { %v1408_v63 = vpop.eup %1407  ;;  %v878_v2 = vadd.f32 1.0, %v1406_v60 }
 0x5ca   :  { %v900_v3 = vsel %vm899_vm2, %v1404_v54, %v896_v61  ;;  %v908_v4 = vmul.f32 %v1408_v63, %v877_v34  ;;  %1409 = vpow2.f32 %v1317_v62  ;;  %vm913_vm4 = vweird.f32 %v1408_v63 }
 0x5cb   :  { %v905_v5 = vsel %vm902_vm3, %v904_v0, %v900_v3  ;;  %1411 = vrcp.f32 %v878_v2  ;;  %vm914_vm6 = vmor %vm912_vm5, %vm913_vm4  ;;  %v933_v23 = vand.u32 2147483648, %v878_v2  ;;  %v931_v31 = vand.u32 2147483647, %v878_v2 }
 0x5cc   :  { %v1133_v6 = vmul.f32 %v1745_v1, %v905_v5  ;;  %v909_v7 = vsub.f32 1.0, %v908_v4  ;;  %vm927_vm9 = vweird.f32 %v878_v2 }
 0x5cd   :  { %v934_v39 = vor.u32 1.1754944e-38, %v933_v23  ;;  %vm932_vm11 = vcmp.eq.f32.partialorder %v931_v31, 8.507059e+37 }
 0x5ce   :  { %1149 = vst [vmem:[#allocation12] sm:$0xff] %v1133_v6  ;;  %v910_v9 = vmul.f32 %v1408_v63, %v909_v7 }
 0x5cf   :  { %v797_v11 = vpop.f32.mrf.mxu2 }
 0x5d0   :  { %v1410_v12 = vpop.eup %1409  ;;  %v911_v13 = vadd.f32 %v1408_v63, %v910_v9  ;;  %v1318_v14 = vmul.f32 -1.442695, %v797_v11 }
 0x5d1   :  { %v1412_v15 = vpop.eup %1411  ;;  %v879_v17 = vadd.f32 1.0, %v1410_v12 }
 0x5d2   :  { %v915_v18 = vsel %vm914_vm6, %v1408_v63, %v911_v13  ;;  %v923_v19 = vmul.f32 %v1412_v15, %v878_v2  ;;  %1413 = vpow2.f32 %v1318_v14  ;;  %vm928_vm8 = vweird.f32 %v1412_v15 }
 0x5d3   :  { %v920_v20 = vsel %vm917_vm7, %v919_v16, %v915_v18  ;;  %1415 = vrcp.f32 %v879_v17  ;;  %vm929_vm10 = vmor %vm927_vm9, %vm928_vm8  ;;  %v948_v46 = vand.u32 2147483648, %v879_v17  ;;  %v946_v29 = vand.u32 2147483647, %v879_v17 }
 0x5d4   :  { %v1134_v21 = vmul.f32 %v1745_v1, %v920_v20  ;;  %v924_v22 = vsub.f32 1.0, %v923_v19  ;;  %vm942_vm13 = vweird.f32 %v879_v17 }
 0x5d5   :  { %v949_v49 = vor.u32 1.1754944e-38, %v948_v46  ;;  %vm947_vm15 = vcmp.eq.f32.partialorder %v946_v29, 8.507059e+37 }
 0x5d6   :  { %1150 = vst [vmem:[#allocation12 + $0x8] sm:$0xff] %v1134_v21  ;;  %v925_v30 = vmul.f32 %v1412_v15, %v924_v22 }
 0x5d7   :  { %v799_v32 = vpop.f32.mrf.mxu2 }
 0x5d8   :  { %v1414_v33 = vpop.eup %1413  ;;  %v926_v35 = vadd.f32 %v1412_v15, %v925_v30  ;;  %v1319_v37 = vmul.f32 -1.442695, %v799_v32 }
 0x5d9   :  { %v1416_v38 = vpop.eup %1415  ;;  %v880_v40 = vadd.f32 1.0, %v1414_v33 }
 0x5da   :  { %v930_v41 = vsel %vm929_vm10, %v1412_v15, %v926_v35  ;;  %v938_v43 = vmul.f32 %v1416_v38, %v879_v17  ;;  %1417 = vpow2.f32 %v1319_v37  ;;  %vm943_vm12 = vweird.f32 %v1416_v38 }
 0x5db   :  { %v935_v42 = vsel %vm932_vm11, %v934_v39, %v930_v41  ;;  %1419 = vrcp.f32 %v880_v40  ;;  %vm944_vm14 = vmor %vm942_vm13, %vm943_vm12  ;;  %v963_v34 = vand.u32 2147483648, %v880_v40  ;;  %v961_v56 = vand.u32 2147483647, %v880_v40 }
 0x5dc   :  { %v1135_v44 = vmul.f32 %v1745_v1, %v935_v42  ;;  %v939_v45 = vsub.f32 1.0, %v938_v43  ;;  %vm957_vm1 = vweird.f32 %v880_v40 }
 0x5dd   :  { %v964_v61 = vor.u32 1.1754944e-38, %v963_v34  ;;  %vm962_vm3 = vcmp.eq.f32.partialorder %v961_v56, 8.507059e+37 }
 0x5de   :  { %1151 = vst [vmem:[#allocation12 + $0x10] sm:$0xff] %v1135_v44  ;;  %v940_v27 = vmul.f32 %v1416_v38, %v939_v45 }
 0x5df   :  { %v802_v24 = vpop.f32.mrf.mxu2 }
 0x5e0   :  { %v1418_v25 = vpop.eup %1417  ;;  %v941_v26 = vadd.f32 %v1416_v38, %v940_v27  ;;  %v1320_v47 = vmul.f32 -1.442695, %v802_v24 }
 0x5e1   :  { %v1420_v48 = vpop.eup %1419  ;;  %v881_v50 = vadd.f32 1.0, %v1418_v25 }
 0x5e2   :  { %v945_v28 = vsel %vm944_vm14, %v1416_v38, %v941_v26  ;;  %v953_v51 = vmul.f32 %v1420_v48, %v880_v40  ;;  %1421 = vpow2.f32 %v1320_v47  ;;  %vm958_vm0 = vweird.f32 %v1420_v48 }
 0x5e3   :  { %v950_v52 = vsel %vm947_vm15, %v949_v49, %v945_v28  ;;  %1423 = vrcp.f32 %v881_v50  ;;  %vm959_vm2 = vmor %vm957_vm1, %vm958_vm0  ;;  %v978_v5 = vand.u32 2147483648, %v881_v50  ;;  %v976_v7 = vand.u32 2147483647, %v881_v50 }
 0x5e4   :  { %v1136_v53 = vmul.f32 %v1745_v1, %v950_v52  ;;  %v954_v54 = vsub.f32 1.0, %v953_v51  ;;  %vm972_vm5 = vweird.f32 %v881_v50 }
 0x5e5   :  { %v979_v13 = vor.u32 1.1754944e-38, %v978_v5  ;;  %vm977_vm7 = vcmp.eq.f32.partialorder %v976_v7, 8.507059e+37 }
 0x5e6   :  { %1152 = vst [vmem:[#allocation12 + $0x18] sm:$0xff] %v1136_v53  ;;  %v955_v55 = vmul.f32 %v1420_v48, %v954_v54 }
 0x5e7   :  { %v804_v57 = vpop.f32.mrf.mxu2 }
 0x5e8   :  { %v1422_v36 = vpop.eup %1421  ;;  %v956_v58 = vadd.f32 %v1420_v48, %v955_v55  ;;  %v1321_v59 = vmul.f32 -1.442695, %v804_v57 }
 0x5e9   :  { %v1424_v60 = vpop.eup %1423  ;;  %v882_v62 = vadd.f32 1.0, %v1422_v36 }
 0x5ea   :  { %v960_v63 = vsel %vm959_vm2, %v1420_v48, %v956_v58  ;;  %v968_v0 = vmul.f32 %v1424_v60, %v881_v50  ;;  %1425 = vpow2.f32 %v1321_v59  ;;  %vm973_vm4 = vweird.f32 %v1424_v60 }
 0x5eb   :  { %v965_v2 = vsel %vm962_vm3, %v964_v61, %v960_v63  ;;  %1427 = vrcp.f32 %v882_v62  ;;  %vm974_vm6 = vmor %vm972_vm5, %vm973_vm4  ;;  %v993_v20 = vand.u32 2147483648, %v882_v62  ;;  %v991_v22 = vand.u32 2147483647, %v882_v62 }
 0x5ec   :  { %v1137_v3 = vmul.f32 %v1745_v1, %v965_v2  ;;  %v969_v4 = vsub.f32 1.0, %v968_v0  ;;  %vm987_vm9 = vweird.f32 %v882_v62 }
 0x5ed   :  { %v994_v35 = vor.u32 1.1754944e-38, %v993_v20  ;;  %vm992_vm11 = vcmp.eq.f32.partialorder %v991_v22, 8.507059e+37 }
 0x5ee   :  { %1153 = vst [vmem:[#allocation12 + $0x20] sm:$0xff] %v1137_v3  ;;  %v970_v6 = vmul.f32 %v1424_v60, %v969_v4 }
 0x5ef   :  { %v807_v8 = vpop.f32.mrf.mxu2 }
 0x5f0   :  { %v1426_v9 = vpop.eup %1425  ;;  %v971_v10 = vadd.f32 %v1424_v60, %v970_v6  ;;  %v1322_v11 = vmul.f32 -1.442695, %v807_v8 }
 0x5f1   :  { %v1428_v12 = vpop.eup %1427  ;;  %v883_v14 = vadd.f32 1.0, %v1426_v9 }
 0x5f2   :  { %v975_v15 = vsel %vm974_vm6, %v1424_v60, %v971_v10  ;;  %v983_v16 = vmul.f32 %v1428_v12, %v882_v62  ;;  %1429 = vpow2.f32 %v1322_v11  ;;  %vm988_vm8 = vweird.f32 %v1428_v12 }
 0x5f3   :  { %v980_v17 = vsel %vm977_vm7, %v979_v13, %v975_v15  ;;  %1431 = vrcp.f32 %v883_v14  ;;  %vm989_vm10 = vmor %vm987_vm9, %vm988_vm8  ;;  %v1008_v42 = vand.u32 2147483648, %v883_v14  ;;  %v1006_v45 = vand.u32 2147483647, %v883_v14 }
 0x5f4   :  { %v1138_v18 = vmul.f32 %v1745_v1, %v980_v17  ;;  %v984_v19 = vsub.f32 1.0, %v983_v16  ;;  %vm1002_vm13 = vweird.f32 %v883_v14 }
 0x5f5   :  { %v1009_v26 = vor.u32 1.1754944e-38, %v1008_v42  ;;  %vm1007_vm15 = vcmp.eq.f32.partialorder %v1006_v45, 8.507059e+37 }
 0x5f6   :  { %1154 = vst [vmem:[#allocation12 + $0x28] sm:$0xff] %v1138_v18  ;;  %v985_v21 = vmul.f32 %v1428_v12, %v984_v19 }
 0x5f7   :  { %v809_v23 = vpop.f32.mrf.mxu2 }
 0x5f8   :  { %v1430_v30 = vpop.eup %1429  ;;  %v986_v31 = vadd.f32 %v1428_v12, %v985_v21  ;;  %v1323_v32 = vmul.f32 -1.442695, %v809_v23 }
 0x5f9   :  { %v1432_v33 = vpop.eup %1431  ;;  %v884_v37 = vadd.f32 1.0, %v1430_v30 }
 0x5fa   :  { %v990_v38 = vsel %vm989_vm10, %v1428_v12, %v986_v31  ;;  %v998_v39 = vmul.f32 %v1432_v33, %v883_v14  ;;  %1433 = vpow2.f32 %v1323_v32  ;;  %vm1003_vm12 = vweird.f32 %v1432_v33 }
 0x5fb   :  { %v995_v40 = vsel %vm992_vm11, %v994_v35, %v990_v38  ;;  %1435 = vrcp.f32 %v884_v37  ;;  %vm1004_vm14 = vmor %vm1002_vm13, %vm1003_vm12  ;;  %v1023_v52 = vand.u32 2147483648, %v884_v37  ;;  %v1021_v54 = vand.u32 2147483647, %v884_v37 }
 0x5fc   :  { %v1139_v41 = vmul.f32 %v1745_v1, %v995_v40  ;;  %v999_v43 = vsub.f32 1.0, %v998_v39  ;;  %vm1017_vm1 = vweird.f32 %v884_v37 }
 0x5fd   :  { %v1024_v58 = vor.u32 1.1754944e-38, %v1023_v52  ;;  %vm1022_vm3 = vcmp.eq.f32.partialorder %v1021_v54, 8.507059e+37 }
 0x5fe   :  { %1155 = vst [vmem:[#allocation12 + $0x30] sm:$0xff] %v1139_v41  ;;  %v1000_v44 = vmul.f32 %v1432_v33, %v999_v43 }
 0x5ff   :  { %v812_v46 = vpop.f32.mrf.mxu2 }
 0x600   :  { %v1434_v27 = vpop.eup %1433  ;;  %v1001_v29 = vadd.f32 %v1432_v33, %v1000_v44  ;;  %v1324_v24 = vmul.f32 -1.442695, %v812_v46 }
 0x601   :  { %v1436_v25 = vpop.eup %1435  ;;  %v885_v47 = vadd.f32 1.0, %v1434_v27 }
 0x602   :  { %v1005_v48 = vsel %vm1004_vm14, %v1432_v33, %v1001_v29  ;;  %v1013_v49 = vmul.f32 %v1436_v25, %v884_v37  ;;  %1437 = vpow2.f32 %v1324_v24  ;;  %vm1018_vm0 = vweird.f32 %v1436_v25 }
 0x603   :  { %v1010_v50 = vsel %vm1007_vm15, %v1009_v26, %v1005_v48  ;;  %1439 = vrcp.f32 %v885_v47  ;;  %vm1019_vm2 = vmor %vm1017_vm1, %vm1018_vm0  ;;  %v1038_v2 = vand.u32 2147483648, %v885_v47  ;;  %v1036_v4 = vand.u32 2147483647, %v885_v47 }
 0x604   :  { %v1140_v28 = vmul.f32 %v1745_v1, %v1010_v50  ;;  %v1014_v51 = vsub.f32 1.0, %v1013_v49  ;;  %vm1032_vm5 = vweird.f32 %v885_v47 }
 0x605   :  { %v1039_v10 = vor.u32 1.1754944e-38, %v1038_v2  ;;  %vm1037_vm7 = vcmp.eq.f32.partialorder %v1036_v4, 8.507059e+37 }
 0x606   :  { %1156 = vst [vmem:[#allocation12 + $0x38] sm:$0xff] %v1140_v28  ;;  %v1015_v53 = vmul.f32 %v1436_v25, %v1014_v51 }
 0x607   :  { %v814_v34 = vpop.f32.mrf.mxu2 }
 0x608   :  { %v1438_v55 = vpop.eup %1437  ;;  %v1016_v56 = vadd.f32 %v1436_v25, %v1015_v53  ;;  %v1325_v57 = vmul.f32 -1.442695, %v814_v34 }
 0x609   :  { %v1440_v36 = vpop.eup %1439  ;;  %v886_v59 = vadd.f32 1.0, %v1438_v55 }
 0x60a   :  { %v1020_v60 = vsel %vm1019_vm2, %v1436_v25, %v1016_v56  ;;  %v1028_v61 = vmul.f32 %v1440_v36, %v885_v47  ;;  %1441 = vpow2.f32 %v1325_v57  ;;  %vm1033_vm4 = vweird.f32 %v1440_v36 }
 0x60b   :  { %v1025_v62 = vsel %vm1022_vm3, %v1024_v58, %v1020_v60  ;;  %1443 = vrcp.f32 %v886_v59  ;;  %vm1034_vm6 = vmor %vm1032_vm5, %vm1033_vm4  ;;  %v1053_v17 = vand.u32 2147483648, %v886_v59  ;;  %v1051_v19 = vand.u32 2147483647, %v886_v59 }
 0x60c   :  { %v1141_v63 = vmul.f32 %v1745_v1, %v1025_v62  ;;  %v1029_v0 = vsub.f32 1.0, %v1028_v61  ;;  %vm1047_vm9 = vweird.f32 %v886_v59 }
 0x60d   :  { %v1054_v31 = vor.u32 1.1754944e-38, %v1053_v17  ;;  %vm1052_vm11 = vcmp.eq.f32.partialorder %v1051_v19, 8.507059e+37 }
 0x60e   :  { %1157 = vst [vmem:[#allocation12 + $0x40] sm:$0xff] %v1141_v63  ;;  %v1030_v3 = vmul.f32 %v1440_v36, %v1029_v0 }
 0x60f   :  { %v817_v5 = vpop.f32.mrf.mxu2 }
 0x610   :  { %v1442_v6 = vpop.eup %1441  ;;  %v1031_v7 = vadd.f32 %v1440_v36, %v1030_v3  ;;  %v1326_v8 = vmul.f32 -1.442695, %v817_v5 }
 0x611   :  { %v1444_v9 = vpop.eup %1443  ;;  %v887_v11 = vadd.f32 1.0, %v1442_v6 }
 0x612   :  { %v1035_v12 = vsel %vm1034_vm6, %v1440_v36, %v1031_v7  ;;  %v1043_v13 = vmul.f32 %v1444_v9, %v886_v59  ;;  %1445 = vpow2.f32 %v1326_v8  ;;  %vm1048_vm8 = vweird.f32 %v1444_v9 }
 0x613   :  { %v1040_v14 = vsel %vm1037_vm7, %v1039_v10, %v1035_v12  ;;  %1447 = vrcp.f32 %v887_v11  ;;  %vm1049_vm10 = vmor %vm1047_vm9, %vm1048_vm8  ;;  %v1068_v40 = vand.u32 2147483648, %v887_v11  ;;  %v1066_v43 = vand.u32 2147483647, %v887_v11 }
 0x614   :  { %v1142_v15 = vmul.f32 %v1745_v1, %v1040_v14  ;;  %v1044_v16 = vsub.f32 1.0, %v1043_v13  ;;  %vm1062_vm13 = vweird.f32 %v887_v11 }
 0x615   :  { %v1069_v29 = vor.u32 1.1754944e-38, %v1068_v40  ;;  %vm1067_vm15 = vcmp.eq.f32.partialorder %v1066_v43, 8.507059e+37 }
 0x616   :  { %1158 = vst [vmem:[#allocation12 + $0x48] sm:$0xff] %v1142_v15  ;;  %v1045_v18 = vmul.f32 %v1444_v9, %v1044_v16 }
 0x617   :  { %v819_v20 = vpop.f32.mrf.mxu2 }
 0x618   :  { %v1446_v21 = vpop.eup %1445  ;;  %v1046_v22 = vadd.f32 %v1444_v9, %v1045_v18  ;;  %v1327_v23 = vmul.f32 -1.442695, %v819_v20 }
 0x619   :  { %v1448_v30 = vpop.eup %1447  ;;  %v888_v32 = vadd.f32 1.0, %v1446_v21 }
 0x61a   :  { %v1050_v33 = vsel %vm1049_vm10, %v1444_v9, %v1046_v22  ;;  %v1058_v35 = vmul.f32 %v1448_v30, %v887_v11  ;;  %1449 = vpow2.f32 %v1327_v23  ;;  %vm1063_vm12 = vweird.f32 %v1448_v30 }
 0x61b   :  { %v1055_v37 = vsel %vm1052_vm11, %v1054_v31, %v1050_v33  ;;  %1451 = vrcp.f32 %v888_v32  ;;  %vm1064_vm14 = vmor %vm1062_vm13, %vm1063_vm12  ;;  %v1083_v50 = vand.u32 2147483648, %v888_v32  ;;  %v1081_v51 = vand.u32 2147483647, %v888_v32 }
 0x61c   :  { %v1143_v38 = vmul.f32 %v1745_v1, %v1055_v37  ;;  %v1059_v39 = vsub.f32 1.0, %v1058_v35  ;;  %vm1077_vm1 = vweird.f32 %v888_v32 }
 0x61d   :  { %v1084_v56 = vor.u32 1.1754944e-38, %v1083_v50  ;;  %vm1082_vm3 = vcmp.eq.f32.partialorder %v1081_v51, 8.507059e+37 }
 0x61e   :  { %1159 = vst [vmem:[#allocation12 + $0x50] sm:$0xff] %v1143_v38  ;;  %v1060_v41 = vmul.f32 %v1448_v30, %v1059_v39 }
 0x61f   :  { %v822_v42 = vpop.f32.mrf.mxu2 }
 0x620   :  { %v1450_v44 = vpop.eup %1449  ;;  %v1061_v45 = vadd.f32 %v1448_v30, %v1060_v41  ;;  %v1328_v46 = vmul.f32 -1.442695, %v822_v42 }
 0x621   :  { %v1452_v27 = vpop.eup %1451  ;;  %v889_v24 = vadd.f32 1.0, %v1450_v44 }
 0x622   :  { %v1065_v25 = vsel %vm1064_vm14, %v1448_v30, %v1061_v45  ;;  %v1073_v26 = vmul.f32 %v1452_v27, %v888_v32  ;;  %1453 = vpow2.f32 %v1328_v46  ;;  %vm1078_vm0 = vweird.f32 %v1452_v27 }
 0x623   :  { %v1070_v47 = vsel %vm1067_vm15, %v1069_v29, %v1065_v25  ;;  %1455 = vrcp.f32 %v889_v24  ;;  %vm1079_vm2 = vmor %vm1077_vm1, %vm1078_vm0  ;;  %v1098_v62 = vand.u32 2147483648, %v889_v24  ;;  %v1096_v0 = vand.u32 2147483647, %v889_v24 }
 0x624   :  { %v1144_v48 = vmul.f32 %v1745_v1, %v1070_v47  ;;  %v1074_v49 = vsub.f32 1.0, %v1073_v26  ;;  %vm1092_vm5 = vweird.f32 %v889_v24 }
 0x625   :  { %v1099_v5 = vor.u32 1.1754944e-38, %v1098_v62  ;;  %vm1097_vm7 = vcmp.eq.f32.partialorder %v1096_v0, 8.507059e+37 }
 0x626   :  { %1160 = vst [vmem:[#allocation12 + $0x58] sm:$0xff] %v1144_v48  ;;  %v1075_v28 = vmul.f32 %v1452_v27, %v1074_v49 }
 0x627   :  { %v824_v52 = vpop.f32.mrf.mxu2 }
 0x628   :  { %v1454_v53 = vpop.eup %1453  ;;  %v1076_v54 = vadd.f32 %v1452_v27, %v1075_v28  ;;  %v1329_v34 = vmul.f32 -1.442695, %v824_v52 }
 0x629   :  { %v1456_v55 = vpop.eup %1455  ;;  %v890_v57 = vadd.f32 1.0, %v1454_v53 }
 0x62a   :  { %v1080_v36 = vsel %vm1079_vm2, %v1452_v27, %v1076_v54  ;;  %v1088_v58 = vmul.f32 %v1456_v55, %v889_v24  ;;  %1457 = vpow2.f32 %v1329_v34  ;;  %vm1093_vm4 = vweird.f32 %v1456_v55 }
 0x62b   :  { %v1085_v59 = vsel %vm1082_vm3, %v1084_v56, %v1080_v36  ;;  %1459 = vrcp.f32 %v890_v57  ;;  %vm1094_vm6 = vmor %vm1092_vm5, %vm1093_vm4  ;;  %v1113_v12 = vand.u32 2147483648, %v890_v57  ;;  %v1111_v14 = vand.u32 2147483647, %v890_v57 }
 0x62c   :  { %v1145_v60 = vmul.f32 %v1745_v1, %v1085_v59  ;;  %v1089_v61 = vsub.f32 1.0, %v1088_v58  ;;  %vm1107_vm9 = vweird.f32 %v890_v57 }
 0x62d   :  { %v1114_v17 = vor.u32 1.1754944e-38, %v1113_v12  ;;  %vm1112_vm11 = vcmp.eq.f32.partialorder %v1111_v14, 8.507059e+37 }
 0x62e   :  { %1161 = vst [vmem:[#allocation12 + $0x60] sm:$0xff] %v1145_v60  ;;  %v1090_v63 = vmul.f32 %v1456_v55, %v1089_v61 }
 0x630   :  { %v1458_v2 = vpop.eup %1457  ;;  %v1091_v3 = vadd.f32 %v1456_v55, %v1090_v63 }
 0x631   :  { %v1460_v4 = vpop.eup %1459  ;;  %v891_v6 = vadd.f32 1.0, %v1458_v2 }
 0x632   :  { %v1095_v7 = vsel %vm1094_vm6, %v1456_v55, %v1091_v3  ;;  %v1103_v8 = vmul.f32 %v1460_v4, %v890_v57  ;;  %vm1108_vm8 = vweird.f32 %v1460_v4 }
 0x633   :  { %v1100_v9 = vsel %vm1097_vm7, %v1099_v5, %v1095_v7  ;;  %1461 = vrcp.f32 %v891_v6  ;;  %vm1109_vm10 = vmor %vm1107_vm9, %vm1108_vm8  ;;  %v1128_v23 = vand.u32 2147483648, %v891_v6  ;;  %v1126_v31 = vand.u32 2147483647, %v891_v6 }
 0x634   :  { %v1146_v10 = vmul.f32 %v1745_v1, %v1100_v9  ;;  %v1104_v11 = vsub.f32 1.0, %v1103_v8  ;;  %vm1122_vm13 = vweird.f32 %v891_v6 }
 0x635   :  { %v1129_v33 = vor.u32 1.1754944e-38, %v1128_v23  ;;  %vm1127_vm15 = vcmp.eq.f32.partialorder %v1126_v31, 8.507059e+37 }
 0x636   :  { %1162 = vst [vmem:[#allocation12 + $0x68] sm:$0xff] %v1146_v10  ;;  %v1105_v13 = vmul.f32 %v1460_v4, %v1104_v11 }
 0x638   :  { %v1106_v15 = vadd.f32 %v1460_v4, %v1105_v13 }
 0x639   :  { %v1462_v16 = vpop.eup %1461 }
 0x63a   :  { %v1110_v18 = vsel %vm1109_vm10, %v1460_v4, %v1106_v15  ;;  %v1118_v19 = vmul.f32 %v1462_v16, %v891_v6  ;;  %vm1123_vm12 = vweird.f32 %v1462_v16 }
 0x63b   :  { %v1115_v20 = vsel %vm1112_vm11, %v1114_v17, %v1110_v18  ;;  %vm1124_vm14 = vmor %vm1122_vm13, %vm1123_vm12 }
 0x63c   :  { %v1147_v21 = vmul.f32 %v1745_v1, %v1115_v20  ;;  %v1119_v22 = vsub.f32 1.0, %v1118_v19 }
 0x63e   :  { %1163 = vst [vmem:[#allocation12 + $0x70] sm:$0xff] %v1147_v21  ;;  %v1120_v30 = vmul.f32 %v1462_v16, %v1119_v22 }
 0x640   :  { %v1121_v32 = vadd.f32 %v1462_v16, %v1120_v30 }
 0x642   :  { %v1125_v35 = vsel %vm1124_vm14, %v1462_v16, %v1121_v32 }
 0x643   :  { %v1130_v37 = vsel %vm1127_vm15, %v1129_v33, %v1125_v35 }
 0x644   :  { %v1148_v38 = vmul.f32 %v1745_v1, %v1130_v37 }
 0x646   :  { %1164 = vst [vmem:[#allocation12 + $0x78] sm:$0xff] %v1148_v38 }
 0x647   :  { %1177 = dma.vmem_to_hbm [thread:$0]  %s1170_s19, 2048, %s1172_s2, [#allocation5], %s1616_s14, %s1616_s14, %s1617_s15  }
 0x648   :  { %1613 = dma.done.wait [#allocation5], 2048  }
 0x649   :  { %1614 = vsyncadd [#allocation5], 4294965248 }
 0x64a   :  { %1182 = vsyncpa [#allocation4], 1 }
 0x64b   :  { %1183 = vsyncpa [#allocation7], 1 }
 0x64c   :  { %1184 = vsyncpa [#allocation10], 1 }
 0x64d   :  { %1185 = vsyncpa [#allocation5], 1 }

</bundles_post_ra>
